<compile_context>
chip_gen: v5e
topology: v5e:2x2
jax: 0.10.0
libtpu: 0.0.40
codegen_flags: <defaults>
</compile_context>

<pallas_src>
import functools

import jax
import jax.numpy as jnp
from jax.experimental import pallas as pl
from jax.experimental.pallas import tpu as pltpu

ALPHA = 3
THR = 0.4


def _int_pow(x, n):
    """x**n for small positive integer n via repeated multiply (VPU only)."""
    acc = x
    for _ in range(n - 1):
        acc = acc * x
    return acc


def _lwce_rowloss_kernel(x_ref, t_ref, o_ref, *, alpha, thr):
    # x_ref, t_ref: (TB, C) input blocks; o_ref: (TB, 1) per-row loss block.
    x = x_ref[...].astype(jnp.float32)
    t = t_ref[...].astype(jnp.float32)

    # alpha_target = (target * (target > thr)) ** alpha, as explicit multiplies.
    thresholded = jnp.where(t > thr, t, 0.0)
    alpha_target = _int_pow(thresholded, alpha)

    # Per-row normalizer of the soft-label weights.
    denom = jnp.sum(alpha_target, axis=1, keepdims=True)            # (TB, 1)

    # Numerically stable logsumexp of the logits per row.
    m = jnp.max(x, axis=1, keepdims=True)                           # (TB, 1)
    shifted = x - m                                                 # (TB, C)
    lse = jnp.log(jnp.sum(jnp.exp(shifted), axis=1, keepdims=True)) # (TB, 1)

    # sum(-p_gt * log_softmax(x)) = lse - sum(alpha_target * shifted) / denom
    # (one exact divide per row; NaN when denom == 0, matching PyTorch).
    num = jnp.sum(alpha_target * shifted, axis=1, keepdims=True)    # (TB, 1)
    o_ref[...] = lse - num / denom


def _pick_block_rows(batch, classes, itemsize,
                     working_set_budget=20 * 1024 * 1024, max_rows=1024):
    """Pick a batch-tile height (multiple of 8) that fits the VMEM budget."""
    # Per row: 2 inputs x 2 pipeline buffers in the input dtype, plus roughly
    # 4 f32-sized temporaries inside the kernel body.
    bytes_per_row = 2 * 2 * classes * itemsize + 4 * classes * 4
    tb = working_set_budget // max(bytes_per_row, 1)
    tb = int(max(8, min(tb, max_rows)))
    tb = (tb // 8) * 8
    b_pad = ((batch + 7) // 8) * 8
    return max(8, min(tb, b_pad))


def label_weighted_cross_entropy_loss(logits, target, *, alpha=ALPHA, thr=THR,
                                      block_rows=None):
    """logits, target: (B, C) float arrays. Returns scalar f32 loss."""
    assert logits.shape == target.shape and logits.ndim == 2
    B, C = logits.shape
    if block_rows is None:
        block_rows = _pick_block_rows(B, C, jnp.dtype(logits.dtype).itemsize)
    assert block_rows % 8 == 0
    grid = (pl.cdiv(B, block_rows),)

    kernel = functools.partial(_lwce_rowloss_kernel, alpha=alpha, thr=thr)

    per_row = pl.pallas_call(
        kernel,
        out_shape=jax.ShapeDtypeStruct((B, 1), jnp.float32),
        grid=grid,
        in_specs=[
            pl.BlockSpec((block_rows, C), lambda i: (i, 0)),
            pl.BlockSpec((block_rows, C), lambda i: (i, 0)),
        ],
        out_specs=pl.BlockSpec((block_rows, 1), lambda i: (i, 0)),
        compiler_params=pltpu.CompilerParams(
            dimension_semantics=("parallel",),
            vmem_limit_bytes=40 * 1024 * 1024,
        ),
    )(logits, target)

    # Tiny final reduction (B scalars) + the single divide by B.
    return jnp.sum(per_row) / B


def _reference(logits, target, alpha=ALPHA, thr=THR):
    thresholded = jnp.where(target > thr, target, 0.0)
    alpha_target = thresholded ** alpha
    p_gt = alpha_target / jnp.sum(alpha_target, axis=1, keepdims=True)
    log_sm = jax.nn.log_softmax(logits, axis=1)
    return jnp.mean(jnp.sum(-p_gt * log_sm, axis=1))


if __name__ == "__main__":
    key = jax.random.PRNGKey(0)

    # Case 1: small single-tile shape (B=8, C=128).
    k1, k2, k3, k4 = jax.random.split(key, 4)
    B1, C1 = 8, 128
    logits1 = jax.random.normal(k1, (B1, C1), dtype=jnp.float32)
    target1 = jax.random.uniform(k2, (B1, C1), dtype=jnp.float32)
    target1 = target1.at[:, 0].set(0.9)  # ensure each row has a value > thr

    loss1 = jax.block_until_ready(
        label_weighted_cross_entropy_loss(logits1, target1))
    ref1 = jax.block_until_ready(_reference(logits1, target1))
    assert jnp.allclose(loss1, ref1, rtol=1e-5, atol=1e-5), (loss1, ref1)

    # Case 2: exercise the batch-tiled grid (grid of 3 blocks, TB=8).
    B2, C2 = 24, 256
    logits2 = jax.random.normal(k3, (B2, C2), dtype=jnp.float32)
    target2 = jax.random.uniform(k4, (B2, C2), dtype=jnp.float32)
    target2 = target2.at[:, 0].set(0.9)

    loss2 = jax.block_until_ready(
        label_weighted_cross_entropy_loss(logits2, target2, block_rows=8))
    ref2 = jax.block_until_ready(_reference(logits2, target2))
    assert jnp.allclose(loss2, ref2, rtol=1e-5, atol=1e-5), (loss2, ref2)

    print("KERNEL_OK")
</pallas_src>

<mosaic_0001>
module attributes {stable_mosaic.version = 11 : i64} {
  func.func @_lwce_rowloss_kernel(%arg0: i32, %arg1: memref<8x128xf32, #tpu.memory_space<vmem>>, %arg2: memref<8x128xf32, #tpu.memory_space<vmem>>, %arg3: memref<8x1xf32, #tpu.memory_space<vmem>>) attributes {dimension_semantics = [#tpu.dimension_semantics<parallel>], iteration_bounds = array<i64: 1>, scalar_prefetch = 0 : i64, scratch_operands = 0 : i64, tpu.core_type = #tpu.core_type<tc>, window_params = [{transform_indices = @transform_0, window_bounds = array<i64: 8, 128>}, {transform_indices = @transform_1, window_bounds = array<i64: 8, 128>}, {transform_indices = @transform_2, window_bounds = array<i64: 8, 1>}]} {
    %c0 = arith.constant 0 : index
    %c0_0 = arith.constant 0 : index
    %0 = vector.load %arg1[%c0, %c0_0] : memref<8x128xf32, #tpu.memory_space<vmem>>, vector<8x128xf32>
    %c0_1 = arith.constant 0 : index
    %c0_2 = arith.constant 0 : index
    %1 = vector.load %arg2[%c0_1, %c0_2] : memref<8x128xf32, #tpu.memory_space<vmem>>, vector<8x128xf32>
    %cst = arith.constant 4.000000e-01 : f32
    %2 = vector.broadcast %cst : f32 to vector<8x128xf32>
    %3 = arith.cmpf ogt, %1, %2 : vector<8x128xf32>
    %cst_3 = arith.constant 0.000000e+00 : f32
    %4 = vector.broadcast %cst_3 : f32 to vector<8x128xf32>
    %5 = arith.select %3, %1, %4 : vector<8x128xi1>, vector<8x128xf32>
    %6 = arith.mulf %5, %5 : vector<8x128xf32>
    %7 = arith.mulf %6, %5 : vector<8x128xf32>
    %cst_4 = arith.constant dense<0.000000e+00> : vector<8xf32>
    %8 = vector.multi_reduction <add>, %7, %cst_4 [1] : vector<8x128xf32> to vector<8xf32>
    %9 = vector.shape_cast %8 : vector<8xf32> to vector<8x1xf32>
    %cst_5 = arith.constant dense<0xFF800000> : vector<8xf32>
    %10 = vector.multi_reduction <maximumf>, %0, %cst_5 [1] : vector<8x128xf32> to vector<8xf32>
    %11 = vector.shape_cast %10 : vector<8xf32> to vector<8x1xf32>
    %12 = vector.broadcast %11 : vector<8x1xf32> to vector<8x128xf32>
    %13 = arith.subf %0, %12 : vector<8x128xf32>
    %14 = math.exp %13 : vector<8x128xf32>
    %cst_6 = arith.constant dense<0.000000e+00> : vector<8xf32>
    %15 = vector.multi_reduction <add>, %14, %cst_6 [1] : vector<8x128xf32> to vector<8xf32>
    %16 = vector.shape_cast %15 : vector<8xf32> to vector<8x1xf32>
    %17 = math.log %16 : vector<8x1xf32>
    %18 = arith.mulf %7, %13 : vector<8x128xf32>
    %cst_7 = arith.constant dense<0.000000e+00> : vector<8xf32>
    %19 = vector.multi_reduction <add>, %18, %cst_7 [1] : vector<8x128xf32> to vector<8xf32>
    %20 = vector.shape_cast %19 : vector<8xf32> to vector<8x1xf32>
    %21 = arith.divf %20, %9 : vector<8x1xf32>
    %22 = arith.subf %17, %21 : vector<8x1xf32>
    %c0_8 = arith.constant 0 : index
    %c0_9 = arith.constant 0 : index
    %23 = vector.load %arg3[%c0_8, %c0_9] : memref<8x1xf32, #tpu.memory_space<vmem>>, vector<8x1xf32>
    tpu.vector_store %arg3[%c0_8, %c0_9], %22 {strides = array<i32>} : memref<8x1xf32, #tpu.memory_space<vmem>>, vector<8x1xf32>,
    return
  }
  func.func @transform_0(%arg0: i32) -> (i32, i32) {
    %c0_i32 = arith.constant 0 : i32
    %c0_i32_0 = arith.constant 0 : i32
    return %arg0, %c0_i32 : i32, i32
  }
  func.func @transform_1(%arg0: i32) -> (i32, i32) {
    %c0_i32 = arith.constant 0 : i32
    %c0_i32_0 = arith.constant 0 : i32
    return %arg0, %c0_i32 : i32, i32
  }
  func.func @transform_2(%arg0: i32) -> (i32, i32) {
    %c0_i32 = arith.constant 0 : i32
    %c0_i32_0 = arith.constant 0 : i32
    return %arg0, %c0_i32 : i32, i32
  }
}

</mosaic_0001>

<bundles_post_ra>
// kernel: tpu_custom_call.1
= control target key start
LH: loop header
LB: loop body
LE: loop exit
PB: predicated region body
PF: predicated region fallthrough
CT: control target
= control target key end

     0   :  { %7 = vsyncpa [#allocation3], 0  ;;  %s169_s0 = inlined_call_operand.hbm [shape: f32[8,128], index: 0, kind: input, shape index: {}]   ;;  %s170_s1 = inlined_call_operand.hbm [shape: f32[8,128], index: 1, kind: input, shape index: {}]   ;;  %s171_s2 = inlined_call_operand.vmem [shape: f32[8,1], index: 2, kind: output, shape index: {}]  }
   0x1   :  { %s14_s11 = sshll.u32 %s169_s0, 4  ;;  %s15_s11 = int_to_ptr.hbm [resolvable:$true] %s14_s11 }
   0x2   :  { %8 = vsyncpa [#allocation5], 0  ;;  %s143_s12 = smov [#allocation2]   ;;  %s25_s16 = sshll.u32 %s170_s1, 4  ;;  %s26_s16 = int_to_ptr.hbm [resolvable:$true] %s25_s16 }
   0x3   :  { %s16_s13 = sshll.u32 %s143_s12, 4  ;;  %s144_s17 = smov [#allocation4]   ;;  %s17_s13 = int_to_ptr.vmem [resolvable:$true] %s16_s13 }
   0x4   :  { %19 = dma.hbm_to_vmem [thread:$0]  %s15_s11, 128, %s17_s13, [#allocation3]  }
   0x5   :  { %s27_s18 = sshll.u32 %s144_s17, 4  ;;  %s28_s18 = int_to_ptr.vmem [resolvable:$true] %s27_s18 }
   0x6   :  { %30 = dma.hbm_to_vmem [thread:$0]  %s26_s16, 128, %s28_s18, [#allocation5]  }
   0x7   :  { %139 = dma.done.wait [#allocation3], 128  }
   0x8   :  { %140 = vsyncadd [#allocation3], 4294967168 }
   0x9   :  { %141 = dma.done.wait [#allocation5], 128  }
   0xa   :  { %142 = vsyncadd [#allocation5], 4294967168  ;;  %v39_v0 = vld [vmem:[#allocation2] sm:$0xff]  ;;  %v40_v1 = vld [vmem:[#allocation4] sm:$0xff]  ;;  %vm75_vm5 = vcmask 7168  }
   0xb   :  { %47 = vmax.xlane.f32.xlu0 %v39_v0  ;;  %vm41_vm0 = vcmp.gt.f32.partialorder %v40_v1, 0.4 }
   0xc   :  { %v42_v2 = vsel %vm41_vm0, %v40_v1, 0.0 }
   0xd   :  { %v43_v3 = vmul.f32 %v42_v2, %v42_v2 }
   0xf   :  { %v44_v4 = vmul.f32 %v43_v3, %v42_v2 }
  0x13   :  { %45 = vadd.xlane.f32.xlu0 %v44_v4 }
  0x7e   :  { %v48_v5 = vpop.xlane.xlu0 %47 }
  0x7f   :  { %v49_v6 = vsub.f32 %v39_v0, %v48_v5 }
  0x81   :  { %v50_v7 = vmul.f32 1.442695, %v49_v6  ;;  %v56_v9 = vmul.f32 %v49_v6, %v44_v4 }
  0x83   :  { %85 = vpow2.f32 %v50_v7 }
  0x86   :  { %v46_v10 = vpop.xlane.xlu0 %45 }
  0x87   :  { %87 = vrcp.f32 %v46_v10  ;;  %vm64_vm1 = vweird.f32 %v46_v10  ;;  %v70_v15 = vand.u32 2147483648, %v46_v10  ;;  %v68_v18 = vand.u32 2147483647, %v46_v10 }
  0x89   :  { %v86_v8 = vpop.eup %85  ;;  %v71_v19 = vor.u32 1.1754944e-38, %v70_v15  ;;  %vm69_vm4 = vcmp.eq.f32.partialorder %v68_v18, 8.507059e+37 }
  0x8a   :  { %52 = vadd.xlane.f32.xlu1 %v86_v8 }
  0x8d   :  { %v88_v11 = vpop.eup %87 }
  0x8e   :  { %v60_v12 = vmul.f32 %v88_v11, %v46_v10  ;;  %vm65_vm2 = vweird.f32 %v88_v11 }
  0x8f   :  { %vm66_vm3 = vmor %vm64_vm1, %vm65_vm2 }
  0x90   :  { %v61_v13 = vsub.f32 1.0, %v60_v12 }
  0x92   :  { %57 = vadd.xlane.f32.xlu1 %v56_v9  ;;  %v62_v14 = vmul.f32 %v88_v11, %v61_v13 }
  0x94   :  { %v63_v17 = vadd.f32 %v88_v11, %v62_v14 }
  0x96   :  { %v67_v20 = vsel %vm66_vm3, %v88_v11, %v63_v17 }
  0x97   :  { %v72_v24 = vsel %vm69_vm4, %v71_v19, %v67_v20 }
  0xfd   :  { %v53_v16 = vpop.xlane.xlu1 %52 }
  0xfe   :  { %89 = vlog2.f32 %v53_v16 }
 0x104   :  { %v90_v21 = vpop.eup %89 }
 0x105   :  { %v55_v22 = vmul.f32 0.6931472, %v90_v21  ;;  %v58_v23 = vpop.xlane.xlu1 %57 }
 0x106   :  { %v73_v25 = vmul.f32 %v72_v24, %v58_v23 }
 0x108   :  { %v74_v26 = vsub.f32 %v55_v22, %v73_v25 }
 0x10a   :  { %76 = vst.msk [vmem:[%s171_s2] sm:$0xff] %vm75_vm5, %v74_v26 }
 0x10b   :  { %81 = vsyncpa [#allocation3], 1 }
 0x10c   :  { %82 = vsyncpa [#allocation5], 1 }

</bundles_post_ra>
